<compile_context>
chip_gen: v7x
topology: tpu7x:2x2x1
jax: 0.10.0
libtpu: 0.0.40
codegen_flags: <defaults>
</compile_context>

<pallas_src>
import functools

import numpy as np
import jax
import jax.numpy as jnp
from jax.experimental import pallas as pl
from jax.experimental.pallas import tpu as pltpu


def _freq_bands(N_freq, logscale):
    if logscale:
        return 2.0 ** np.linspace(0.0, N_freq - 1, N_freq)
    return np.linspace(1.0, 2.0 ** (N_freq - 1), N_freq)


def _round_up(a, m):
    return ((a + m - 1) // m) * m


def _make_embed_kernel(freq_bands, logscale):
    # Frequencies are static (derived from N_freq); bake them in as constants.
    freqs = tuple(float(f) for f in freq_bands)

    def kernel(x_ref, o_ref):
        # x_ref: (bm, L) lane-dense tile.  o_ref: (K, bm, L) output slab.
        x = x_ref[...]
        o_ref[0] = x.astype(o_ref.dtype)
        fx = x
        for i, f in enumerate(freqs):
            if logscale:
                # f_i = 2**i exactly: exact doubling, saves full-tile VALU muls.
                fx = x if i == 0 else fx + fx
            else:
                fx = f * x
            o_ref[1 + 2 * i] = jnp.sin(fx).astype(o_ref.dtype)
            o_ref[2 + 2 * i] = jnp.cos(fx).astype(o_ref.dtype)

    return kernel


@functools.partial(
    jax.jit,
    static_argnames=("N_freq", "logscale", "layout", "out_dtype", "block_m", "lane"),
)
def embedding_forward(x, *, N_freq, logscale=True, layout="torch",
                      out_dtype=None, block_m=256, lane=512):
    """Pallas equivalent of Embedding.forward.

    x: (B, C) float array.
    layout="torch":  (B, C*(1+2*N_freq)) in the exact torch.cat order.
    layout="planes": (K, B, C) kernel-native slab (k=0 identity, then
                     sin/cos per frequency) with no relayout pass.
    out_dtype: output dtype (default x.dtype); bf16 recommended for bf16 MLPs.
    """
    B, C = x.shape
    K = 1 + 2 * N_freq
    out_dtype = x.dtype if out_dtype is None else out_dtype
    itemsize_in = np.dtype(x.dtype).itemsize
    itemsize_out = np.dtype(out_dtype).itemsize
    freq_bands = _freq_bands(N_freq, logscale)

    # ---- lane-dense packing: (B, C) -> (M, L), L multiple of 128 ----------
    n = B * C
    L = int(lane)
    assert L % 128 == 0, "lane must be a multiple of 128"
    M = pl.cdiv(n, L)
    pad = M * L - n
    x_flat = x.reshape(-1)
    if pad:
        x_flat = jnp.pad(x_flat, (0, pad))
    x2 = x_flat.reshape(M, L)

    # ---- row-block size ----------------------------------------------------
    if M <= 8:
        bm = M                       # single (possibly <8-row) full block
    else:
        # >=2 grid steps so v7x's two TensorCores both get work on the
        # "parallel" axis; bm a multiple of 8 (f32 sublane tiling), <= block_m.
        bm = min(block_m, _round_up(pl.cdiv(M, 2), 8))
        # Keep the output block <= ~12 MiB: v7x has only 64 MiB VMEM per TC,
        # and in+out double-buffering must stay inside the 32 MiB scoped limit.
        while bm > 8 and K * bm * L * itemsize_out > 12 * 1024 * 1024:
            bm = _round_up(bm // 2, 8)
    grid = (pl.cdiv(M, bm),)

    kernel = _make_embed_kernel(freq_bands, logscale)

    cost = pl.CostEstimate(
        flops=int(2 * N_freq * M * L),              # freq*x (or doublings)
        transcendentals=int(2 * N_freq * M * L),    # sin + cos per frequency
        bytes_accessed=int(M * L * itemsize_in + K * M * L * itemsize_out),
    )

    out_slab = pl.pallas_call(
        kernel,
        out_shape=jax.ShapeDtypeStruct((K, M, L), out_dtype),
        grid_spec=pl.GridSpec(
            grid=grid,
            in_specs=[pl.BlockSpec((bm, L), lambda i: (i, 0))],
            out_specs=pl.BlockSpec((K, bm, L), lambda i: (0, i, 0)),
        ),
        compiler_params=pltpu.CompilerParams(
            dimension_semantics=("parallel",),
            vmem_limit_bytes=32 * 1024 * 1024,
        ),
        cost_estimate=cost,
    )(x2)

    # slab[k, m, l] = part_k(x_flat[m*L + l]); since L % C == 0 for the default
    # lane width this reshapes freely (no data movement) to (K, B, C).
    planes = out_slab.reshape(K, M * L)[:, :n].reshape(K, B, C)
    if layout == "planes":
        return planes

    # ---- torch.cat order (B, K*C): one XLA relayout pass (see TODO above) --
    return jnp.transpose(planes, (1, 0, 2)).reshape(B, K * C)


def embedding_reference(x, N_freq, logscale=True):
    """Pure-JAX reference mirroring the PyTorch forward exactly."""
    freq_bands = _freq_bands(N_freq, logscale)
    out = [x]
    for f in freq_bands:
        for func in (jnp.sin, jnp.cos):
            out.append(func(float(f) * x))
    return jnp.concatenate(out, axis=-1)


if __name__ == "__main__":
    # Module hyper-parameters (this module has no learned weights).
    in_channels = 4
    N_freq = 6
    K = 1 + 2 * N_freq
    key = jax.random.PRNGKey(0)

    # f32, exact torch layout: tiny block, single ragged block, multi-step grid.
    for B in (16, 1000, 4096):
        x = jax.random.normal(jax.random.fold_in(key, B),
                              (B, in_channels), dtype=jnp.float32)
        out = jax.block_until_ready(
            embedding_forward(x, N_freq=N_freq, logscale=True))
        ref = embedding_reference(x, N_freq, logscale=True)
        assert out.shape == (B, in_channels * K), out.shape
        np.testing.assert_allclose(np.asarray(out), np.asarray(ref),
                                   rtol=1e-5, atol=1e-5)

    # bf16 output planes (recommended when the consumer MLP is bf16).
    xb = jax.random.normal(jax.random.fold_in(key, 7),
                           (1000, in_channels), dtype=jnp.float32)
    out_bf16 = jax.block_until_ready(
        embedding_forward(xb, N_freq=N_freq, out_dtype=jnp.bfloat16))
    ref_f32 = embedding_reference(xb, N_freq)
    np.testing.assert_allclose(np.asarray(out_bf16.astype(jnp.float32)),
                               np.asarray(ref_f32), rtol=2e-2, atol=5e-2)

    # "planes" layout (preferred handoff: no torch-order transpose pass).
    out_planes = jax.block_until_ready(
        embedding_forward(xb, N_freq=N_freq, layout="planes"))
    ref_planes = np.asarray(ref_f32).reshape(1000, K, in_channels).transpose(1, 0, 2)
    np.testing.assert_allclose(np.asarray(out_planes), ref_planes,
                               rtol=1e-5, atol=1e-5)

    print("KERNEL_OK")
</pallas_src>

<mosaic_0001>
module attributes {stable_mosaic.version = 11 : i64} {
  func.func @kernel(%arg0: i32, %arg1: memref<1x512xf32, #tpu.memory_space<vmem>>, %arg2: memref<13x1x512xf32, #tpu.memory_space<vmem>>) attributes {dimension_semantics = [#tpu.dimension_semantics<parallel>], iteration_bounds = array<i64: 1>, scalar_prefetch = 0 : i64, scratch_operands = 0 : i64, tpu.core_type = #tpu.core_type<tc>, window_params = [{transform_indices = @transform_0, window_bounds = array<i64: 1, 512>}, {transform_indices = @transform_1, window_bounds = array<i64: 13, 1, 512>}]} {
    %c0 = arith.constant 0 : index
    %c0_0 = arith.constant 0 : index
    %0 = vector.load %arg1[%c0, %c0_0] : memref<1x512xf32, #tpu.memory_space<vmem>>, vector<1x512xf32>
    %c0_1 = arith.constant 0 : index
    %c0_2 = arith.constant 0 : index
    %c0_3 = arith.constant 0 : index
    %1 = vector.load %arg2[%c0_1, %c0_2, %c0_3] : memref<13x1x512xf32, #tpu.memory_space<vmem>>, vector<1x1x512xf32>
    %2 = vector.shape_cast %1 : vector<1x1x512xf32> to vector<1x512xf32>
    %3 = vector.shape_cast %0 : vector<1x512xf32> to vector<1x1x512xf32>
    tpu.vector_store %arg2[%c0_1, %c0_2, %c0_3], %3 {strides = array<i32>} : memref<13x1x512xf32, #tpu.memory_space<vmem>>, vector<1x1x512xf32>,
    %4 = math.sin %0 : vector<1x512xf32>
    %c1 = arith.constant 1 : index
    %c0_4 = arith.constant 0 : index
    %c0_5 = arith.constant 0 : index
    %5 = vector.load %arg2[%c1, %c0_4, %c0_5] : memref<13x1x512xf32, #tpu.memory_space<vmem>>, vector<1x1x512xf32>
    %6 = vector.shape_cast %5 : vector<1x1x512xf32> to vector<1x512xf32>
    %7 = vector.shape_cast %4 : vector<1x512xf32> to vector<1x1x512xf32>
    tpu.vector_store %arg2[%c1, %c0_4, %c0_5], %7 {strides = array<i32>} : memref<13x1x512xf32, #tpu.memory_space<vmem>>, vector<1x1x512xf32>,
    %8 = math.cos %0 : vector<1x512xf32>
    %c2 = arith.constant 2 : index
    %c0_6 = arith.constant 0 : index
    %c0_7 = arith.constant 0 : index
    %9 = vector.load %arg2[%c2, %c0_6, %c0_7] : memref<13x1x512xf32, #tpu.memory_space<vmem>>, vector<1x1x512xf32>
    %10 = vector.shape_cast %9 : vector<1x1x512xf32> to vector<1x512xf32>
    %11 = vector.shape_cast %8 : vector<1x512xf32> to vector<1x1x512xf32>
    tpu.vector_store %arg2[%c2, %c0_6, %c0_7], %11 {strides = array<i32>} : memref<13x1x512xf32, #tpu.memory_space<vmem>>, vector<1x1x512xf32>,
    %12 = arith.addf %0, %0 : vector<1x512xf32>
    %13 = math.sin %12 : vector<1x512xf32>
    %c3 = arith.constant 3 : index
    %c0_8 = arith.constant 0 : index
    %c0_9 = arith.constant 0 : index
    %14 = vector.load %arg2[%c3, %c0_8, %c0_9] : memref<13x1x512xf32, #tpu.memory_space<vmem>>, vector<1x1x512xf32>
    %15 = vector.shape_cast %14 : vector<1x1x512xf32> to vector<1x512xf32>
    %16 = vector.shape_cast %13 : vector<1x512xf32> to vector<1x1x512xf32>
    tpu.vector_store %arg2[%c3, %c0_8, %c0_9], %16 {strides = array<i32>} : memref<13x1x512xf32, #tpu.memory_space<vmem>>, vector<1x1x512xf32>,
    %17 = math.cos %12 : vector<1x512xf32>
    %c4 = arith.constant 4 : index
    %c0_10 = arith.constant 0 : index
    %c0_11 = arith.constant 0 : index
    %18 = vector.load %arg2[%c4, %c0_10, %c0_11] : memref<13x1x512xf32, #tpu.memory_space<vmem>>, vector<1x1x512xf32>
    %19 = vector.shape_cast %18 : vector<1x1x512xf32> to vector<1x512xf32>
    %20 = vector.shape_cast %17 : vector<1x512xf32> to vector<1x1x512xf32>
    tpu.vector_store %arg2[%c4, %c0_10, %c0_11], %20 {strides = array<i32>} : memref<13x1x512xf32, #tpu.memory_space<vmem>>, vector<1x1x512xf32>,
    %21 = arith.addf %12, %12 : vector<1x512xf32>
    %22 = math.sin %21 : vector<1x512xf32>
    %c5 = arith.constant 5 : index
    %c0_12 = arith.constant 0 : index
    %c0_13 = arith.constant 0 : index
    %23 = vector.load %arg2[%c5, %c0_12, %c0_13] : memref<13x1x512xf32, #tpu.memory_space<vmem>>, vector<1x1x512xf32>
    %24 = vector.shape_cast %23 : vector<1x1x512xf32> to vector<1x512xf32>
    %25 = vector.shape_cast %22 : vector<1x512xf32> to vector<1x1x512xf32>
    tpu.vector_store %arg2[%c5, %c0_12, %c0_13], %25 {strides = array<i32>} : memref<13x1x512xf32, #tpu.memory_space<vmem>>, vector<1x1x512xf32>,
    %26 = math.cos %21 : vector<1x512xf32>
    %c6 = arith.constant 6 : index
    %c0_14 = arith.constant 0 : index
    %c0_15 = arith.constant 0 : index
    %27 = vector.load %arg2[%c6, %c0_14, %c0_15] : memref<13x1x512xf32, #tpu.memory_space<vmem>>, vector<1x1x512xf32>
    %28 = vector.shape_cast %27 : vector<1x1x512xf32> to vector<1x512xf32>
    %29 = vector.shape_cast %26 : vector<1x512xf32> to vector<1x1x512xf32>
    tpu.vector_store %arg2[%c6, %c0_14, %c0_15], %29 {strides = array<i32>} : memref<13x1x512xf32, #tpu.memory_space<vmem>>, vector<1x1x512xf32>,
    %30 = arith.addf %21, %21 : vector<1x512xf32>
    %31 = math.sin %30 : vector<1x512xf32>
    %c7 = arith.constant 7 : index
    %c0_16 = arith.constant 0 : index
    %c0_17 = arith.constant 0 : index
    %32 = vector.load %arg2[%c7, %c0_16, %c0_17] : memref<13x1x512xf32, #tpu.memory_space<vmem>>, vector<1x1x512xf32>
    %33 = vector.shape_cast %32 : vector<1x1x512xf32> to vector<1x512xf32>
    %34 = vector.shape_cast %31 : vector<1x512xf32> to vector<1x1x512xf32>
    tpu.vector_store %arg2[%c7, %c0_16, %c0_17], %34 {strides = array<i32>} : memref<13x1x512xf32, #tpu.memory_space<vmem>>, vector<1x1x512xf32>,
    %35 = math.cos %30 : vector<1x512xf32>
    %c8 = arith.constant 8 : index
    %c0_18 = arith.constant 0 : index
    %c0_19 = arith.constant 0 : index
    %36 = vector.load %arg2[%c8, %c0_18, %c0_19] : memref<13x1x512xf32, #tpu.memory_space<vmem>>, vector<1x1x512xf32>
    %37 = vector.shape_cast %36 : vector<1x1x512xf32> to vector<1x512xf32>
    %38 = vector.shape_cast %35 : vector<1x512xf32> to vector<1x1x512xf32>
    tpu.vector_store %arg2[%c8, %c0_18, %c0_19], %38 {strides = array<i32>} : memref<13x1x512xf32, #tpu.memory_space<vmem>>, vector<1x1x512xf32>,
    %39 = arith.addf %30, %30 : vector<1x512xf32>
    %40 = math.sin %39 : vector<1x512xf32>
    %c9 = arith.constant 9 : index
    %c0_20 = arith.constant 0 : index
    %c0_21 = arith.constant 0 : index
    %41 = vector.load %arg2[%c9, %c0_20, %c0_21] : memref<13x1x512xf32, #tpu.memory_space<vmem>>, vector<1x1x512xf32>
    %42 = vector.shape_cast %41 : vector<1x1x512xf32> to vector<1x512xf32>
    %43 = vector.shape_cast %40 : vector<1x512xf32> to vector<1x1x512xf32>
    tpu.vector_store %arg2[%c9, %c0_20, %c0_21], %43 {strides = array<i32>} : memref<13x1x512xf32, #tpu.memory_space<vmem>>, vector<1x1x512xf32>,
    %44 = math.cos %39 : vector<1x512xf32>
    %c10 = arith.constant 10 : index
    %c0_22 = arith.constant 0 : index
    %c0_23 = arith.constant 0 : index
    %45 = vector.load %arg2[%c10, %c0_22, %c0_23] : memref<13x1x512xf32, #tpu.memory_space<vmem>>, vector<1x1x512xf32>
    %46 = vector.shape_cast %45 : vector<1x1x512xf32> to vector<1x512xf32>
    %47 = vector.shape_cast %44 : vector<1x512xf32> to vector<1x1x512xf32>
    tpu.vector_store %arg2[%c10, %c0_22, %c0_23], %47 {strides = array<i32>} : memref<13x1x512xf32, #tpu.memory_space<vmem>>, vector<1x1x512xf32>,
    %48 = arith.addf %39, %39 : vector<1x512xf32>
    %49 = math.sin %48 : vector<1x512xf32>
    %c11 = arith.constant 11 : index
    %c0_24 = arith.constant 0 : index
    %c0_25 = arith.constant 0 : index
    %50 = vector.load %arg2[%c11, %c0_24, %c0_25] : memref<13x1x512xf32, #tpu.memory_space<vmem>>, vector<1x1x512xf32>
    %51 = vector.shape_cast %50 : vector<1x1x512xf32> to vector<1x512xf32>
    %52 = vector.shape_cast %49 : vector<1x512xf32> to vector<1x1x512xf32>
    tpu.vector_store %arg2[%c11, %c0_24, %c0_25], %52 {strides = array<i32>} : memref<13x1x512xf32, #tpu.memory_space<vmem>>, vector<1x1x512xf32>,
    %53 = math.cos %48 : vector<1x512xf32>
    %c12 = arith.constant 12 : index
    %c0_26 = arith.constant 0 : index
    %c0_27 = arith.constant 0 : index
    %54 = vector.load %arg2[%c12, %c0_26, %c0_27] : memref<13x1x512xf32, #tpu.memory_space<vmem>>, vector<1x1x512xf32>
    %55 = vector.shape_cast %54 : vector<1x1x512xf32> to vector<1x512xf32>
    %56 = vector.shape_cast %53 : vector<1x512xf32> to vector<1x1x512xf32>
    tpu.vector_store %arg2[%c12, %c0_26, %c0_27], %56 {strides = array<i32>} : memref<13x1x512xf32, #tpu.memory_space<vmem>>, vector<1x1x512xf32>,
    return
  }
  func.func @transform_0(%arg0: i32) -> (i32, i32) {
    %c0_i32 = arith.constant 0 : i32
    %c0_i32_0 = arith.constant 0 : i32
    return %arg0, %c0_i32 : i32, i32
  }
  func.func @transform_1(%arg0: i32) -> (i32, i32, i32) {
    %c0_i32 = arith.constant 0 : i32
    %c0_i32_0 = arith.constant 0 : i32
    %c0_i32_1 = arith.constant 0 : i32
    return %c0_i32, %arg0, %c0_i32_0 : i32, i32, i32
  }
}

</mosaic_0001>

<bundles_post_ra>
// kernel: embedding_forward.1
= control target key start
LH: loop header
LB: loop body
LE: loop exit
PB: predicated region body
PF: predicated region fallthrough
CT: control target
= control target key end

     0   :  { %v9_v0 = vlaneseq  ;;  %v1403_v28 = vmov 683565275   ;;  %v1404_v30 = vmov 2475754826   ;;  %v1405_v32 = vmov 2131351028   ;;  %s2037_s0 = inlined_call_operand.vmem [shape: f32[1,512], index: 0, kind: input, shape index: {}]   ;;  %s2038_s1 = inlined_call_operand.vmem [shape: f32[13,1,512], index: 1, kind: output, shape index: {}]  }
   0x1   :  { %v1422_v1 = vld [vmem:[%s2037_s0] sm:$0xf]  ;;  %v1406_v34 = vmov 2102212464   ;;  %v1407_v36 = vmov 920167782  }
   0x2   :  { %vm1424_vm0 = vcmp.lt.s32.totalorder %v9_v0, 512  ;;  %v17_v3 = vand.u32 2139095040, %v1422_v1  ;;  %v14_v4 = vand.u32 2147483647, %v1422_v1  ;;  %v1438_v5 = vadd.f32 %v1422_v1, %v1422_v1 }
   0x3   :  { %13 = vst.msk [vmem:[%s2038_s1] sm:$0xf] %vm1424_vm0, %v1422_v1  ;;  %v1408_v43 = vmov 1326507024   ;;  %vm16_vm15 = vcmp.lt.s32.totalorder %v1422_v1, 0 }
   0x4   :  { %v18_v6 = vshrl.u32 %v17_v3, 23  ;;  %v21_v7 = vand.u32 8388607, %v14_v4  ;;  %v226_v8 = vand.u32 2147483647, %v1438_v5  ;;  %v229_v9 = vand.u32 2139095040, %v1438_v5 }
   0x5   :  { %v1448_v13 = vadd.f32 %v1438_v5, %v1438_v5  ;;  %vm1533_vm14 = vcmp.le.f32.partialorder %v14_v4, 0.7853982 }
   0x6   :  { %v1289_v10 = vadd.s32 4294967169, %v18_v6  ;;  %v230_v11 = vshrl.u32 %v229_v9, 23  ;;  %v233_v12 = vand.u32 8388607, %v226_v8  ;;  %v22_v15 = vor.u32 8388608, %v21_v7 }
   0x7   :  { %v441_v18 = vand.u32 2139095040, %v1448_v13  ;;  %v438_v25 = vand.u32 2147483647, %v1448_v13 }
   0x8   :  { %v24_v14 = vadd.s32 1, %v1289_v10  ;;  %v1299_v16 = vadd.s32 4294967169, %v230_v11  ;;  %v234_v17 = vor.u32 8388608, %v233_v12  ;;  %v1451_v23 = vshll.u32 %v22_v15, 8 }
   0x9   :  { %v1456_v26 = vshrl.u32 %v441_v18, 23 }
   0xa   :  { %vm25_vm1 = vcmp.gt.s32.totalorder %v24_v14, 0  ;;  %v236_v20 = vadd.s32 1, %v1299_v16  ;;  %v1453_v24 = vshll.u32 %v234_v17, 8 }
   0xb   :  { %v26_v19 = vsel %vm25_vm1, %v24_v14, 0 }
   0xc   :  { %v27_v21 = vshrl.u32 %v26_v19, 5  ;;  %v28_v22 = vand.u32 31, %v26_v19  ;;  %vm237_vm2 = vcmp.gt.s32.totalorder %v236_v20, 0 }
   0xd   :  { %v238_v48 = vsel %vm237_vm2, %v236_v20, 0  ;;  %vm228_vm2 = vcmp.lt.s32.totalorder %v1438_v5, 0 }
   0xe   :  { %v29_v27 = vsub.s32 32, %v28_v22  ;;  %v31_v29 = vshll.u32 %v1403_v28, %v28_v22  ;;  %v34_v31 = vshll.u32 %v1404_v30, %v28_v22  ;;  %v37_v33 = vshll.u32 %v1405_v32, %v28_v22 }
   0xf   :  { %v40_v35 = vshll.u32 %v1406_v34, %v28_v22  ;;  %v43_v37 = vshll.u32 %v1407_v36, %v28_v22  ;;  %vm46_vm3 = vcmp.lt.s32.totalorder %v27_v21, 1  ;;  %vm47_vm4 = vcmp.lt.s32.totalorder %v27_v21, 2 }
  0x10   :  { %v30_v38 = vshrl.u32 %v1403_v28, %v29_v27  ;;  %v32_v39 = vshrl.u32 %v1404_v30, %v29_v27  ;;  %v35_v40 = vshrl.u32 %v1405_v32, %v29_v27  ;;  %v38_v41 = vshrl.u32 %v1406_v34, %v29_v27 }
  0x11   :  { %v41_v42 = vshrl.u32 %v1407_v36, %v29_v27  ;;  %v44_v44 = vshrl.u32 %v1408_v43, %v29_v27  ;;  %vm48_vm5 = vcmp.lt.s32.totalorder %v27_v21, 3  ;;  %vm49_vm6 = vcmp.lt.s32.totalorder %v27_v21, 4 }
  0x12   :  { %v33_v45 = vor.u32 %v32_v39, %v31_v29  ;;  %v36_v46 = vor.u32 %v35_v40, %v34_v31  ;;  %v39_v47 = vor.u32 %v38_v41, %v37_v33  ;;  %v239_v51 = vshrl.u32 %v238_v48, 5 }
  0x13   :  { %v42_v49 = vor.u32 %v41_v42, %v40_v35  ;;  %v45_v50 = vor.u32 %v44_v44, %v43_v37  ;;  %v240_v52 = vand.u32 31, %v238_v48  ;;  %v1309_v35 = vadd.s32 4294967169, %v1456_v26 }
  0x14   :  { %v50_v53 = vsel %vm46_vm3, %v30_v38, %v33_v45  ;;  %v51_v54 = vsel %vm49_vm6, %v39_v47, 2102212464  ;;  %v54_v55 = vsel %vm46_vm3, %v33_v45, %v36_v46  ;;  %v58_v56 = vsel %vm46_vm3, %v36_v46, %v39_v47 }
  0x15   :  { %v52_v57 = vsel %vm48_vm5, %v36_v46, %v51_v54  ;;  %v55_v58 = vsel %vm49_vm6, %v42_v49, 920167782  ;;  %v59_v59 = vsel %vm49_vm6, %v45_v50, 1326507024  ;;  %v241_v60 = vsub.s32 32, %v240_v52 }
  0x16   :  { %v53_v61 = vsel %vm47_vm4, %v50_v53, %v52_v57  ;;  %v56_v62 = vsel %vm48_vm5, %v39_v47, %v55_v58  ;;  %v60_v63 = vsel %vm48_vm5, %v42_v49, %v59_v59  ;;  %v243_v0 = vshll.u32 %v1403_v28, %v240_v52 }
  0x17   :  { %v57_v3 = vsel %vm47_vm4, %v54_v55, %v56_v62  ;;  %v61_v6 = vsel %vm47_vm4, %v58_v56, %v60_v63  ;;  %v69_v7 = vmul.u32 %v1451_v23, %v53_v61  ;;  %v242_v9 = vshrl.u32 %v1403_v28, %v241_v60 }
  0x18   :  { %v1483_v10 = vmul.u32.u64.low %v1451_v23, %v61_v6  ;;  %v1484_v11 = vmul.u32.u64.high %v1451_v23, %v61_v6, %v1483_v10  ;;  %v1487_v12 = vmul.u32.u64.low %v1451_v23, %v57_v3  ;;  %v1488_v14 = vmul.u32.u64.high %v1451_v23, %v57_v3, %v1487_v12 }
  0x19   :  { %v244_v15 = vshrl.u32 %v1404_v30, %v241_v60  ;;  %v246_v16 = vshll.u32 %v1404_v30, %v240_v52  ;;  %v247_v17 = vshrl.u32 %v1405_v32, %v241_v60  ;;  %v249_v18 = vshll.u32 %v1405_v32, %v240_v52 }
  0x1a   :  { %v250_v19 = vshrl.u32 %v1406_v34, %v241_v60  ;;  %v252_v20 = vshll.u32 %v1406_v34, %v240_v52  ;;  %v253_v21 = vshrl.u32 %v1407_v36, %v241_v60  ;;  %v255_v22 = vshll.u32 %v1407_v36, %v240_v52 }
  0x1b   :  { %v245_v27 = vor.u32 %v244_v15, %v243_v0  ;;  %v248_v23 = vor.u32 %v247_v17, %v246_v16  ;;  %v256_v29 = vshrl.u32 %v1408_v43, %v241_v60  ;;  %vm258_vm7 = vcmp.lt.s32.totalorder %v239_v51, 1 }
  0x1c   :  { %vm71_vm8 = vc.u32 %v1484_v11, %v1487_v12  ;;  %v72_v31 = vadd.s32 1, %v1488_v14  ;;  %v251_v33 = vor.u32 %v250_v19, %v249_v18  ;;  %v254_v37 = vor.u32 %v253_v21, %v252_v20 }
  0x1d   :  { %v257_v38 = vor.u32 %v256_v29, %v255_v22  ;;  %vm259_vm9 = vcmp.lt.s32.totalorder %v239_v51, 2  ;;  %vm260_vm10 = vcmp.lt.s32.totalorder %v239_v51, 3  ;;  %vm261_vm11 = vcmp.lt.s32.totalorder %v239_v51, 4 }
  0x1e   :  { %v73_v39 = vsel %vm71_vm8, %v72_v31, %v1488_v14  ;;  %v262_v40 = vsel %vm258_vm7, %v242_v9, %v245_v27  ;;  %v266_v41 = vsel %vm258_vm7, %v245_v27, %v248_v23  ;;  %v263_v44 = vsel %vm261_vm11, %v251_v33, 2102212464 }
  0x1f   :  { %v74_v42 = vadd.s32 %v73_v39, %v69_v7  ;;  %v267_v45 = vsel %vm261_vm11, %v254_v37, 920167782  ;;  %v270_v46 = vsel %vm258_vm7, %v248_v23, %v251_v33  ;;  %v264_v47 = vsel %vm260_vm10, %v248_v23, %v263_v44 }
  0x20   :  { %v268_v48 = vsel %vm260_vm10, %v251_v33, %v267_v45  ;;  %v271_v49 = vsel %vm261_vm11, %v257_v38, 1326507024  ;;  %v448_v26 = vadd.s32 1, %v1309_v35  ;;  %v1511_v54 = vadd.f32 %v1448_v13, %v1448_v13 }
  0x21   :  { %v75_v50 = vadd.s32 536870912, %v74_v42  ;;  %v269_v52 = vsel %vm259_vm9, %v266_v41, %v268_v48  ;;  %v272_v53 = vsel %vm260_vm10, %v254_v37, %v271_v49  ;;  %v265_v55 = vsel %vm259_vm9, %v262_v40, %v264_v47 }
  0x22   :  { %v273_v56 = vsel %vm259_vm9, %v270_v46, %v272_v53  ;;  %v1516_v57 = vmul.u32.u64.low %v1453_v24, %v269_v52  ;;  %v1517_v58 = vmul.u32.u64.high %v1453_v24, %v269_v52, %v1516_v57  ;;  %vm449_vm12 = vcmp.gt.s32.totalorder %v448_v26, 0 }
  0x23   :  { %v76_v59 = vshrl.u32 %v75_v50, 30  ;;  %v1520_v60 = vmul.u32.u64.low %v1453_v24, %v273_v56  ;;  %v1521_v61 = vmul.u32.u64.high %v1453_v24, %v273_v56, %v1520_v60  ;;  %v450_v62 = vsel %vm449_vm12, %v448_v26, 0 }
  0x24   :  { %v281_v0 = vmul.u32 %v1453_v24, %v265_v55  ;;  %v445_v3 = vand.u32 8388607, %v438_v25  ;;  %v653_v51 = vand.u32 2139095040, %v1511_v54  ;;  %v284_v6 = vadd.s32 1, %v1517_v58 }
  0x25   :  { %v77_v63 = vshll.u32 %v76_v59, 30  ;;  %vm283_vm13 = vc.u32 %v1521_v61, %v1516_v57  ;;  %v452_v9 = vand.u32 31, %v450_v62  ;;  %v100_v18 = vsub.s32 4, %v76_v59 }
  0x26   :  { %v285_v10 = vsel %vm283_vm13, %v284_v6, %v1517_v58  ;;  %v446_v16 = vor.u32 8388608, %v445_v3  ;;  %v654_v17 = vshrl.u32 %v653_v51, 23  ;;  %v650_v24 = vand.u32 2147483647, %v1511_v54 }
  0x27   :  { %v78_v7 = vsub.s32 %v74_v42, %v77_v63  ;;  %v286_v15 = vadd.s32 %v285_v10, %v281_v0  ;;  %v453_v20 = vsub.s32 32, %v452_v9  ;;  %v70_v22 = vadd.s32 %v1487_v12, %v1484_v11 }
  0x28   :  { %v1540_v29 = vshrl.u32 %v450_v62, 5  ;;  %v1542_v31 = vshll.u32 %v446_v16, 8  ;;  %v1544_v33 = vadd.s32 4294967169, %v654_v17  ;;  %v101_v35 = vsel %vm16_vm15, %v100_v18, %v76_v59 }
  0x29   :  { %v80_v14 = vsub.s32 0, %v78_v7  ;;  %v287_v27 = vadd.s32 536870912, %v286_v15  ;;  %v1549_v4 = vadd.s32 %v1516_v57, %v1521_v61  ;;  %v1553_v38 = vand.u32 8388607, %v650_v24 }
  0x2a   :  { %v455_v12 = vshll.u32 %v1403_v28, %v452_v9  ;;  %v456_v39 = vshrl.u32 %v1404_v30, %v453_v20  ;;  %v458_v40 = vshll.u32 %v1404_v30, %v452_v9  ;;  %v459_v42 = vshrl.u32 %v1405_v32, %v453_v20 }
  0x2b   :  { %v1290_v19 = vmin.u32 %v80_v14, %v78_v7  ;;  %v288_v37 = vshrl.u32 %v287_v27, 30  ;;  %v461_v44 = vshll.u32 %v1405_v32, %v452_v9  ;;  %v462_v45 = vshrl.u32 %v1406_v34, %v453_v20 }
  0x2c   :  { %v103_v46 = vsel %vm1533_vm14, 0, %v101_v35  ;;  %v464_v47 = vshll.u32 %v1406_v34, %v452_v9  ;;  %v465_v48 = vshrl.u32 %v1407_v36, %v453_v20  ;;  %v467_v50 = vshll.u32 %v1407_v36, %v452_v9 }
  0x2d   :  { %v82_v23 = vclz %v1290_v19  ;;  %v289_v41 = vshll.u32 %v288_v37, 30  ;;  %v468_v52 = vshrl.u32 %v1408_v43, %v453_v20  ;;  %v454_v57 = vshrl.u32 %v1403_v28, %v453_v20 }
  0x2e   :  { %v457_v59 = vor.u32 %v456_v39, %v455_v12  ;;  %v460_v60 = vor.u32 %v459_v42, %v458_v40  ;;  %v463_v61 = vor.u32 %v462_v45, %v461_v44  ;;  %vm470_vm3 = vcmp.lt.s32.totalorder %v1540_v29, 1 }
  0x2f   :  { %v1291_v11 = vadd.s32 4294967294, %v82_v23  ;;  %v1566_v26 = vsub.s32 %v286_v15, %v289_v41  ;;  %vm473_vm4 = vcmp.lt.s32.totalorder %v1540_v29, 4  ;;  %v466_v3 = vor.u32 %v465_v48, %v464_v47 }
  0x30   :  { %v469_v51 = vor.u32 %v468_v52, %v467_v50  ;;  %v475_v6 = vsel %vm473_vm4, %v463_v61, 2102212464  ;;  %v107_v10 = vadd.s32 3, %v103_v46  ;;  %v312_v14 = vsub.s32 4, %v288_v37 }
  0x31   :  { %vm1292_vm1 = vcmp.lt.s32.totalorder %v1291_v11, 0  ;;  %v292_v58 = vsub.s32 0, %v1566_v26  ;;  %vm1579_vm5 = vcmp.le.f32.partialorder %v226_v8, 0.7853982  ;;  %vm471_vm6 = vcmp.lt.s32.totalorder %v1540_v29, 2 }
  0x32   :  { %v85_v49 = vsel %vm1292_vm1, 0, %v1291_v11  ;;  %vm472_vm7 = vcmp.lt.s32.totalorder %v1540_v29, 3  ;;  %v474_v17 = vsel %vm470_vm3, %v454_v57, %v457_v59  ;;  %v479_v8 = vsel %vm473_vm4, %v466_v3, 920167782 }
  0x33   :  { %v86_v53 = vsub.s32 32, %v85_v49  ;;  %v87_v55 = vshll.u32 %v78_v7, %v85_v49  ;;  %v90_v56 = vsub.s32 4294967266, %v85_v49  ;;  %v1300_v0 = vmin.u32 %v292_v58, %v1566_v26 }
  0x34   :  { %v476_v20 = vsel %vm472_vm7, %v460_v60, %v475_v6  ;;  %v482_v23 = vsel %vm470_vm3, %v460_v60, %v463_v61  ;;  %v483_v35 = vsel %vm473_vm4, %v469_v51, 1326507024  ;;  %v313_v12 = vsel %vm228_vm2, %v312_v14, %v288_v37 }
  0x35   :  { %v88_v62 = vshrl.u32 %v70_v22, %v86_v53  ;;  %v91_v63 = vadd.s32 127, %v90_v56  ;;  %v294_v16 = vclz %v1300_v0  ;;  %v478_v22 = vsel %vm470_vm3, %v457_v59, %v460_v60 }
  0x36   :  { %v480_v39 = vsel %vm472_vm7, %v463_v61, %v479_v8  ;;  %v484_v40 = vsel %vm472_vm7, %v466_v3, %v483_v35  ;;  %v477_v41 = vsel %vm471_vm6, %v474_v17, %v476_v20  ;;  %v660_v53 = vadd.s32 1, %v1544_v33 }
  0x37   :  { %v89_v7 = vor.u32 %v88_v62, %v87_v55  ;;  %v92_v9 = vshll.u32 %v91_v63, 23  ;;  %v1301_v27 = vadd.s32 4294967294, %v294_v16  ;;  %v481_v42 = vsel %vm471_vm6, %v478_v22, %v480_v39 }
  0x38   :  { %v485_v44 = vsel %vm471_vm6, %v482_v23, %v484_v40  ;;  %v1609_v56 = vand.u32 3, %v103_v46  ;;  %v1612_v57 = vmul.u32.u64.low %v1542_v31, %v481_v42  ;;  %v1613_v58 = vmul.u32.u64.high %v1542_v31, %v481_v42, %v1612_v57 }
  0x39   :  { %v93_v18 = vor.u32 4788187, %v92_v9  ;;  %v96_v19 = vcvt.s32.f32 %v89_v7  ;;  %vm1302_vm8 = vcmp.lt.s32.totalorder %v1301_v27, 0  ;;  %v1616_v29 = vand.u32 3, %v107_v10 }
  0x3a   :  { %v297_v47 = vsel %vm1302_vm8, 0, %v1301_v27  ;;  %v1604_v48 = vmul.u32.u64.low %v1542_v31, %v485_v44  ;;  %v1605_v49 = vmul.u32.u64.high %v1542_v31, %v485_v44, %v1604_v48  ;;  %vm661_vm9 = vcmp.gt.s32.totalorder %v660_v53, 0 }
  0x3b   :  { %v94_v11 = vand.u32 2147483647, %v93_v18  ;;  %v298_v50 = vsub.s32 32, %v297_v47  ;;  %v299_v37 = vshll.u32 %v1566_v26, %v297_v47  ;;  %v302_v52 = vsub.s32 4294967266, %v297_v47 }
  0x3c   :  { %v315_v33 = vsel %vm1579_vm5, 0, %v313_v12  ;;  %v493_v46 = vmul.u32 %v1542_v31, %v477_v41  ;;  %v662_v61 = vsel %vm661_vm9, %v660_v53, 0  ;;  %vm495_vm10 = vc.u32 %v1605_v49, %v1612_v57 }
  0x3d   :  { %v97_v45 = vmul.f32 %v96_v19, %v94_v11  ;;  %v300_v59 = vshrl.u32 %v1549_v4, %v298_v50  ;;  %v303_v60 = vadd.s32 127, %v302_v52  ;;  %v496_v4 = vadd.s32 1, %v1613_v58 }
  0x3e   :  { %v664_v3 = vand.u32 31, %v662_v61  ;;  %vm113_vm11 = vcmp.eq.s32.totalorder %v1616_v29, 2  ;;  %vm218_vm12 = vcmp.eq.s32.totalorder %v1609_v56, 2  ;;  %v319_v31 = vadd.s32 3, %v315_v33 }
  0x3f   :  { %v98_v55 = vxor.u32 2147483648, %v97_v45  ;;  %v301_v63 = vor.u32 %v300_v59, %v299_v37  ;;  %v304_v0 = vshll.u32 %v303_v60, 23  ;;  %v1632_v7 = vand.u32 3, %v315_v33 }
  0x40   :  { %v497_v21 = vsel %vm495_vm10, %v496_v4, %v1613_v58  ;;  %v665_v9 = vsub.s32 32, %v664_v3  ;;  %vm110_vm13 = vcmp.eq.s32.totalorder %v1616_v29, 0  ;;  %v658_v16 = vor.u32 8388608, %v1553_v38 }
  0x41   :  { %v99_v26 = vsel %vm16_vm15, %v98_v55, %v97_v45  ;;  %v305_v51 = vor.u32 4788187, %v304_v0  ;;  %v308_v6 = vcvt.s32.f32 %v301_v63  ;;  %v498_v14 = vadd.s32 %v497_v21, %v493_v46 }
  0x42   :  { %v102_v62 = vsel %vm1533_vm14, %v1422_v1, %v99_v26  ;;  %vm215_vm14 = vcmp.eq.s32.totalorder %v1609_v56, 0  ;;  %v1638_v17 = vshrl.u32 %v662_v61, 5  ;;  %vm109_vm15 = vcmp.lt.s32.totalorder %v1616_v29, 2 }
  0x43   :  { %1379 = vcosq.f32 %v102_v62  ;;  %v306_v10 = vand.u32 2147483647, %v305_v51  ;;  %vm214_vm1 = vcmp.lt.s32.totalorder %v1609_v56, 2  ;;  %v667_v18 = vshll.u32 %v1403_v28, %v664_v3 }
  0x44   :  { %1381 = vsinq.f32 %v102_v62  ;;  %v668_v19 = vshrl.u32 %v1404_v30, %v665_v9  ;;  %v673_v20 = vshll.u32 %v1405_v32, %v664_v3  ;;  %v676_v22 = vshll.u32 %v1406_v34, %v664_v3 }
  0x45   :  { %vm106_vm3 = vweird.f32 %v1422_v1  ;;  %v309_v27 = vmul.f32 %v308_v6, %v306_v10  ;;  %v499_v8 = vadd.s32 536870912, %v498_v14  ;;  %v674_v38 = vshrl.u32 %v1406_v34, %v665_v9 }
  0x46   :  { %v677_v23 = vshrl.u32 %v1407_v36, %v665_v9  ;;  %v670_v35 = vshll.u32 %v1404_v30, %v664_v3  ;;  %v671_v11 = vshrl.u32 %v1405_v32, %v665_v9  ;;  %v679_v12 = vshll.u32 %v1407_v36, %v664_v3 }
  0x47   :  { %v680_v39 = vshrl.u32 %v1408_v43, %v665_v9  ;;  %v310_v40 = vxor.u32 2147483648, %v309_v27  ;;  %v1653_v41 = vand.u32 3, %v319_v31  ;;  %v1655_v42 = vshrl.u32 %v499_v8, 30 }
  0x48   :  { %v1657_v44 = vshll.u32 %v658_v16, 8  ;;  %v666_v45 = vshrl.u32 %v1403_v28, %v665_v9  ;;  %v669_v47 = vor.u32 %v668_v19, %v667_v18  ;;  %v678_v48 = vor.u32 %v677_v23, %v676_v22 }
  0x49   :  { %vm682_vm4 = vcmp.lt.s32.totalorder %v1638_v17, 1  ;;  %v311_v50 = vsel %vm228_vm2, %v310_v40, %v309_v27  ;;  %v501_v37 = vshll.u32 %v1655_v42, 30  ;;  %v675_v52 = vor.u32 %v674_v38, %v673_v20 }
  0x4a   :  { %vm685_vm6 = vcmp.lt.s32.totalorder %v1638_v17, 4  ;;  %v314_v55 = vsel %vm1579_vm5, %v1438_v5, %v311_v50  ;;  %v672_v58 = vor.u32 %v671_v11, %v670_v35  ;;  %v681_v59 = vor.u32 %v680_v39, %v679_v12 }
  0x4b   :  { %vm683_vm7 = vcmp.lt.s32.totalorder %v1638_v17, 2  ;;  %1383 = vcosq.f32 %v314_v55  ;;  %v1669_v33 = vsub.s32 %v498_v14, %v501_v37  ;;  %v687_v46 = vsel %vm685_vm6, %v675_v52, 2102212464 }
  0x4c   :  { %1385 = vsinq.f32 %v314_v55  ;;  %vm684_vm2 = vcmp.lt.s32.totalorder %v1638_v17, 3  ;;  %v691_v15 = vsel %vm685_vm6, %v678_v48, 920167782  ;;  %vm440_vm5 = vcmp.lt.s32.totalorder %v1448_v13, 0 }
  0x4d   :  { %v1380_v53 = vpop.eup %1379  ;;  %v504_v0 = vsub.s32 0, %v1669_v33  ;;  %v686_v4 = vsel %vm682_vm4, %v666_v45, %v669_v47  ;;  %v688_v6 = vsel %vm684_vm2, %v672_v58, %v687_v46  ;;  %v690_v31 = vsel %vm682_vm4, %v669_v47, %v672_v58 }
  0x4e   :  { %v1382_v60 = vpop.eup %1381  ;;  %v114_v26 = vxor.u32 2147483648, %v1380_v53  ;;  %vm426_vm8 = vcmp.lt.s32.totalorder %v1632_v7, 2  ;;  %v692_v14 = vsel %vm684_vm2, %v675_v52, %v691_v15  ;;  %vm318_vm9 = vweird.f32 %v1438_v5 }
  0x4f   :  { %v111_v61 = vxor.u32 2147483648, %v1382_v60  ;;  %v1310_v10 = vmin.u32 %v504_v0, %v1669_v33  ;;  %vm427_vm10 = vcmp.eq.s32.totalorder %v1632_v7, 0  ;;  %v524_v56 = vsub.s32 4, %v1655_v42 }
  0x50   :  { %v115_v62 = vsel %vm113_vm11, %v114_v26, %v1382_v60  ;;  %v220_v63 = vsel %vm218_vm12, %v114_v26, %v1382_v60  ;;  %vm430_vm11 = vcmp.eq.s32.totalorder %v1632_v7, 2  ;;  %vm321_vm12 = vcmp.lt.s32.totalorder %v1653_v41, 2 }
  0x51   :  { %v112_v3 = vsel %vm110_vm13, %v1380_v53, %v111_v61  ;;  %v217_v51 = vsel %vm215_vm14, %v1380_v53, %v111_v61  ;;  %v506_v1 = vclz %v1310_v10  ;;  %v1721_v29 = vadd.f32 %v1511_v54, %v1511_v54 }
  0x52   :  { %v116_v21 = vsel %vm109_vm15, %v112_v3, %v115_v62  ;;  %v221_v9 = vsel %vm214_vm1, %v217_v51, %v220_v63  ;;  %v689_v19 = vsel %vm683_vm7, %v686_v4, %v688_v6  ;;  %v693_v20 = vsel %vm683_vm7, %v690_v31, %v692_v14 }
  0x53   :  { %v117_v16 = vsel %vm106_vm3, nan, %v116_v21  ;;  %v222_v18 = vsel %vm106_vm3, nan, %v221_v9  ;;  %v694_v22 = vsel %vm682_vm4, %v672_v58, %v675_v52  ;;  %v695_v27 = vsel %vm685_vm6, %v681_v59, 1326507024 }
  0x54   :  { %1293 = vst.msk [vmem:[%s2038_s1 + $0x4] sm:$0xf] %vm1424_vm0, %v117_v16  ;;  %1298 = vst.msk [vmem:[%s2038_s1 + $0x8] sm:$0xf] %vm1424_vm0, %v222_v18  ;;  %v1311_v8 = vadd.s32 4294967294, %v506_v1  ;;  %v696_v38 = vsel %vm684_vm2, %v678_v48, %v695_v27  ;;  %v1734_v23 = vmul.u32.u64.low %v1657_v44, %v693_v20  ;;  %v1735_v35 = vmul.u32.u64.high %v1657_v44, %v693_v20, %v1734_v23 }
  0x55   :  { %vm322_vm13 = vcmp.eq.s32.totalorder %v1653_v41, 0  ;;  %vm325_vm14 = vcmp.eq.s32.totalorder %v1653_v41, 2  ;;  %v494_v11 = vadd.s32 %v1612_v57, %v1605_v49  ;;  %v697_v12 = vsel %vm683_vm7, %v694_v22, %v696_v38  ;;  %v1384_v39 = vpop.eup %1383 }
  0x56   :  { %vm1312_vm15 = vcmp.lt.s32.totalorder %v1311_v8, 0  ;;  %v1745_v40 = vmul.u32.u64.low %v1657_v44, %v697_v12  ;;  %v1746_v45 = vmul.u32.u64.high %v1657_v44, %v697_v12, %v1745_v40  ;;  %v865_v47 = vand.u32 2139095040, %v1721_v29  ;;  %v1386_v48 = vpop.eup %1385 }
  0x57   :  { %v326_v50 = vxor.u32 2147483648, %v1384_v39  ;;  %v509_v37 = vsel %vm1312_vm15, 0, %v1311_v8  ;;  %v525_v52 = vsel %vm440_vm5, %v524_v56, %v1655_v42  ;;  %v705_v49 = vmul.u32 %v1657_v44, %v689_v19 }
  0x58   :  { %v323_v57 = vxor.u32 2147483648, %v1386_v48  ;;  %v510_v17 = vsub.s32 32, %v509_v37  ;;  %v511_v53 = vshll.u32 %v1669_v33, %v509_v37  ;;  %v514_v55 = vsub.s32 4294967266, %v509_v37 }
  0x59   :  { %v327_v58 = vsel %vm325_vm14, %v326_v50, %v1386_v48  ;;  %v432_v59 = vsel %vm430_vm11, %v326_v50, %v1386_v48  ;;  %v708_v60 = vadd.s32 1, %v1735_v35  ;;  %v866_v26 = vshrl.u32 %v865_v47, 23 }
  0x5a   :  { %v324_v46 = vsel %vm322_vm13, %v1384_v39, %v323_v57  ;;  %v429_v42 = vsel %vm427_vm10, %v1384_v39, %v323_v57  ;;  %v512_v44 = vshrl.u32 %v494_v11, %v510_v17  ;;  %v515_v61 = vadd.s32 127, %v514_v55 }
  0x5b   :  { %v328_v33 = vsel %vm321_vm12, %v324_v46, %v327_v58  ;;  %v433_v15 = vsel %vm426_vm8, %v429_v42, %v432_v59  ;;  %vm1769_vm1 = vcmp.le.f32.partialorder %v438_v25, 0.7853982  ;;  %vm707_vm3 = vc.u32 %v1746_v45, %v1734_v23 }
  0x5c   :  { %v329_v63 = vsel %vm318_vm9, nan, %v328_v33  ;;  %v434_v0 = vsel %vm318_vm9, nan, %v433_v15  ;;  %v513_v41 = vor.u32 %v512_v44, %v511_v53  ;;  %v516_v4 = vshll.u32 %v515_v61, 23 }
  0x5d   :  { %1303 = vst.msk [vmem:[%s2038_s1 + $0xc] sm:$0xf] %vm1424_vm0, %v329_v63  ;;  %1308 = vst.msk [vmem:[%s2038_s1 + $0x10] sm:$0xf] %vm1424_vm0, %v434_v0  ;;  %v527_v25 = vsel %vm1769_vm1, 0, %v525_v52  ;;  %v709_v5 = vsel %vm707_vm3, %v708_v60, %v1735_v35  ;;  %v1329_v3 = vadd.s32 4294967169, %v866_v26  ;;  %v1795_v21 = vadd.f32 %v1721_v29, %v1721_v29 }
  0x5e   :  { %v862_v7 = vand.u32 2147483647, %v1721_v29  ;;  %v517_v51 = vor.u32 4788187, %v516_v4  ;;  %v520_v6 = vcvt.s32.f32 %v513_v41  ;;  %v710_v31 = vadd.s32 %v709_v5, %v705_v49 }
  0x5f   :  { %v872_v9 = vadd.s32 1, %v1329_v3  ;;  %v531_v16 = vadd.s32 3, %v527_v25  ;;  %v1077_v20 = vand.u32 2139095040, %v1795_v21  ;;  %vm652_vm6 = vcmp.lt.s32.totalorder %v1511_v54, 0 }
  0x60   :  { %v518_v10 = vand.u32 2147483647, %v517_v51  ;;  %v711_v14 = vadd.s32 536870912, %v710_v31  ;;  %v869_v18 = vand.u32 8388607, %v862_v7  ;;  %v1803_v35 = vand.u32 3, %v527_v25 }
  0x61   :  { %vm873_vm4 = vcmp.gt.s32.totalorder %v872_v9, 0  ;;  %v1801_v38 = vand.u32 3, %v531_v16  ;;  %v1078_v48 = vshrl.u32 %v1077_v20, 23  ;;  %v706_v60 = vadd.s32 %v1734_v23, %v1746_v45 }
  0x62   :  { %v521_v1 = vmul.f32 %v520_v6, %v518_v10  ;;  %v712_v56 = vshrl.u32 %v711_v14, 30  ;;  %v874_v19 = vsel %vm873_vm4, %v872_v9, 0  ;;  %v870_v11 = vor.u32 8388608, %v869_v18 }
  0x63   :  { %v876_v22 = vand.u32 31, %v874_v19  ;;  %v1809_v47 = vshrl.u32 %v874_v19, 5  ;;  %vm537_vm7 = vcmp.eq.s32.totalorder %v1801_v38, 2  ;;  %vm642_vm2 = vcmp.eq.s32.totalorder %v1803_v35, 2 }
  0x64   :  { %v522_v27 = vxor.u32 2147483648, %v521_v1  ;;  %v713_v8 = vshll.u32 %v712_v56, 30  ;;  %v736_v17 = vsub.s32 4, %v712_v56  ;;  %v1827_v46 = vshll.u32 %v870_v11, 8 }
  0x65   :  { %v877_v12 = vsub.s32 32, %v876_v22  ;;  %v879_v37 = vshll.u32 %v1403_v28, %v876_v22  ;;  %v882_v49 = vshll.u32 %v1404_v30, %v876_v22  ;;  %v885_v53 = vshll.u32 %v1405_v32, %v876_v22 }
  0x66   :  { %v523_v39 = vsel %vm440_vm5, %v522_v27, %v521_v1  ;;  %v1807_v40 = vsub.s32 %v710_v31, %v713_v8  ;;  %v888_v59 = vshll.u32 %v1406_v34, %v876_v22  ;;  %vm534_vm5 = vcmp.eq.s32.totalorder %v1801_v38, 0 }
  0x67   :  { %v526_v50 = vsel %vm1769_vm1, %v1448_v13, %v523_v39  ;;  %v880_v52 = vshrl.u32 %v1404_v30, %v877_v12  ;;  %v883_v55 = vshrl.u32 %v1405_v32, %v877_v12  ;;  %v886_v58 = vshrl.u32 %v1406_v34, %v877_v12 }
  0x68   :  { %1387 = vcosq.f32 %v526_v50  ;;  %v716_v57 = vsub.s32 0, %v1807_v40  ;;  %vm639_vm8 = vcmp.eq.s32.totalorder %v1803_v35, 0  ;;  %v878_v42 = vshrl.u32 %v1403_v28, %v877_v12 }
  0x69   :  { %1389 = vsinq.f32 %v526_v50  ;;  %v881_v44 = vor.u32 %v880_v52, %v879_v37  ;;  %v884_v61 = vor.u32 %v883_v55, %v882_v49  ;;  %v889_v33 = vshrl.u32 %v1407_v36, %v877_v12 }
  0x6a   :  { %v1320_v26 = vmin.u32 %v716_v57, %v1807_v40  ;;  %vm533_vm9 = vcmp.lt.s32.totalorder %v1801_v38, 2  ;;  %vm638_vm10 = vcmp.lt.s32.totalorder %v1803_v35, 2  ;;  %v737_v23 = vsel %vm652_vm6, %v736_v17, %v712_v56 }
  0x6b   :  { %v887_v45 = vor.u32 %v886_v58, %v885_v53  ;;  %v1339_v62 = vadd.s32 4294967169, %v1078_v48  ;;  %vm530_vm11 = vweird.f32 %v1448_v13  ;;  %v890_v63 = vor.u32 %v889_v33, %v888_v59 }
  0x6c   :  { %v718_v15 = vclz %v1320_v26  ;;  %v891_v0 = vshll.u32 %v1407_v36, %v876_v22  ;;  %v892_v41 = vshrl.u32 %v1408_v43, %v877_v12  ;;  %vm894_vm12 = vcmp.lt.s32.totalorder %v1809_v47, 1 }
  0x6d   :  { %vm895_vm13 = vcmp.lt.s32.totalorder %v1809_v47, 2  ;;  %vm896_vm14 = vcmp.lt.s32.totalorder %v1809_v47, 3  ;;  %vm897_vm15 = vcmp.lt.s32.totalorder %v1809_v47, 4  ;;  %v898_v5 = vsel %vm894_vm12, %v878_v42, %v881_v44 }
  0x6e   :  { %v1321_v4 = vadd.s32 4294967294, %v718_v15  ;;  %v893_v25 = vor.u32 %v892_v41, %v891_v0  ;;  %v899_v3 = vsel %vm897_vm15, %v887_v45, 2102212464  ;;  %v902_v51 = vsel %vm894_vm12, %v881_v44, %v884_v61 }
  0x6f   :  { %vm1846_vm1 = vcmp.le.f32.partialorder %v650_v24, 0.7853982  ;;  %v900_v31 = vsel %vm896_vm14, %v884_v61, %v899_v3  ;;  %v903_v9 = vsel %vm897_vm15, %v890_v63, 920167782  ;;  %v906_v10 = vsel %vm894_vm12, %v884_v61, %v887_v45 }
  0x70   :  { %vm1322_vm3 = vcmp.lt.s32.totalorder %v1321_v4, 0  ;;  %v901_v16 = vsel %vm895_vm13, %v898_v5, %v900_v31  ;;  %v904_v18 = vsel %vm896_vm14, %v887_v45, %v903_v9  ;;  %v907_v1 = vsel %vm897_vm15, %v893_v25, 1326507024 }
  0x71   :  { %v721_v14 = vsel %vm1322_vm3, 0, %v1321_v4  ;;  %v905_v22 = vsel %vm895_vm13, %v902_v51, %v904_v18  ;;  %v908_v11 = vsel %vm896_vm14, %v890_v63, %v907_v1  ;;  %v917_v26 = vmul.u32 %v1827_v46, %v901_v16 }
  0x72   :  { %v1388_v56 = vpop.eup %1387  ;;  %v722_v19 = vsub.s32 32, %v721_v14  ;;  %v723_v24 = vshll.u32 %v1807_v40, %v721_v14  ;;  %v726_v20 = vsub.s32 4294967266, %v721_v14  ;;  %v909_v40 = vsel %vm895_vm13, %v906_v10, %v908_v11 }
  0x73   :  { %v1390_v27 = vpop.eup %1389  ;;  %v538_v8 = vxor.u32 2147483648, %v1388_v56  ;;  %v1862_v12 = vmul.u32.u64.low %v1827_v46, %v905_v22  ;;  %v1863_v39 = vmul.u32.u64.high %v1827_v46, %v905_v22, %v1862_v12  ;;  %v739_v38 = vsel %vm1846_vm1, 0, %v737_v23 }
  0x74   :  { %v535_v48 = vxor.u32 2147483648, %v1390_v27  ;;  %v724_v50 = vshrl.u32 %v706_v60, %v722_v19  ;;  %v727_v37 = vadd.s32 127, %v726_v20  ;;  %v1084_v13 = vadd.s32 1, %v1339_v62 }
  0x75   :  { %v539_v52 = vsel %vm537_vm7, %v538_v8, %v1390_v27  ;;  %v644_v49 = vsel %vm642_vm2, %v538_v8, %v1390_v27  ;;  %v1873_v57 = vmul.u32.u64.low %v1827_v46, %v909_v40  ;;  %v1874_v17 = vmul.u32.u64.high %v1827_v46, %v909_v40, %v1873_v57 }
  0x76   :  { %v536_v53 = vsel %vm534_vm5, %v1388_v56, %v535_v48  ;;  %v641_v55 = vsel %vm639_vm8, %v1388_v56, %v535_v48  ;;  %v725_v58 = vor.u32 %v724_v50, %v723_v24  ;;  %v728_v59 = vshll.u32 %v727_v37, 23 }
  0x77   :  { %v540_v47 = vsel %vm533_vm9, %v536_v53, %v539_v52  ;;  %v645_v60 = vsel %vm638_vm10, %v641_v55, %v644_v49  ;;  %v920_v42 = vadd.s32 1, %v1863_v39  ;;  %vm919_vm4 = vc.u32 %v1874_v17, %v1862_v12 }
  0x78   :  { %v541_v44 = vsel %vm530_vm11, nan, %v540_v47  ;;  %v646_v61 = vsel %vm530_vm11, nan, %v645_v60  ;;  %v729_v33 = vor.u32 4788187, %v728_v59  ;;  %v732_v15 = vcvt.s32.f32 %v725_v58 }
  0x79   :  { %1313 = vst.msk [vmem:[%s2038_s1 + $0x14] sm:$0xf] %vm1424_vm0, %v541_v44  ;;  %1318 = vst.msk [vmem:[%s2038_s1 + $0x18] sm:$0xf] %vm1424_vm0, %v646_v61  ;;  %v921_v46 = vsel %vm919_vm4, %v920_v42, %v1863_v39  ;;  %vm1085_vm7 = vcmp.gt.s32.totalorder %v1084_v13, 0  ;;  %v743_v0 = vadd.s32 3, %v739_v38  ;;  %vm742_vm5 = vweird.f32 %v1511_v54 }
  0x7a   :  { %v730_v35 = vand.u32 2147483647, %v729_v33  ;;  %v922_v45 = vadd.s32 %v921_v46, %v917_v26  ;;  %v1074_v41 = vand.u32 2147483647, %v1795_v21  ;;  %v1086_v4 = vsel %vm1085_vm7, %v1084_v13, 0 }
  0x7b   :  { %v1088_v5 = vand.u32 31, %v1086_v4  ;;  %v1910_v62 = vand.u32 3, %v743_v0  ;;  %v1912_v9 = vand.u32 3, %v739_v38  ;;  %v1927_v22 = vshrl.u32 %v1086_v4, 5 }
  0x7c   :  { %v733_v63 = vmul.f32 %v732_v15, %v730_v35  ;;  %v923_v25 = vadd.s32 536870912, %v922_v45  ;;  %v1081_v10 = vand.u32 8388607, %v1074_v41  ;;  %vm864_vm4 = vcmp.lt.s32.totalorder %v1721_v29, 0 }
  0x7d   :  { %v1089_v23 = vsub.s32 32, %v1088_v5  ;;  %v1094_v18 = vshll.u32 %v1404_v30, %v1088_v5  ;;  %v1097_v1 = vshll.u32 %v1405_v32, %v1088_v5  ;;  %v1100_v24 = vshll.u32 %v1406_v34, %v1088_v5 }
  0x7e   :  { %v734_v3 = vxor.u32 2147483648, %v733_v63  ;;  %v1906_v51 = vshrl.u32 %v923_v25, 30  ;;  %v1091_v27 = vshll.u32 %v1403_v28, %v1088_v5  ;;  %v1103_v11 = vshll.u32 %v1407_v36, %v1088_v5 }
  0x7f   :  { %v1095_v56 = vshrl.u32 %v1405_v32, %v1089_v23  ;;  %v1098_v19 = vshrl.u32 %v1406_v34, %v1089_v23  ;;  %v1101_v6 = vshrl.u32 %v1407_v36, %v1089_v23  ;;  %v1092_v8 = vshrl.u32 %v1404_v30, %v1089_v23 }
  0x80   :  { %v735_v31 = vsel %vm652_vm6, %v734_v3, %v733_v63  ;;  %v925_v16 = vshll.u32 %v1906_v51, 30  ;;  %vm851_vm6 = vcmp.eq.s32.totalorder %v1912_v9, 0  ;;  %v1082_v39 = vor.u32 8388608, %v1081_v10 }
  0x81   :  { %v738_v14 = vsel %vm1846_vm1, %v1511_v54, %v735_v31  ;;  %vm850_vm2 = vcmp.lt.s32.totalorder %v1912_v9, 2  ;;  %v1096_v34 = vor.u32 %v1095_v56, %v1094_v18  ;;  %v1099_v48 = vor.u32 %v1098_v19, %v1097_v1 }
  0x82   :  { %1391 = vcosq.f32 %v738_v14  ;;  %v1925_v20 = vsub.s32 %v922_v45, %v925_v16  ;;  %v1102_v50 = vor.u32 %v1101_v6, %v1100_v24  ;;  %v1104_v37 = vshrl.u32 %v1408_v43, %v1089_v23 }
  0x83   :  { %1393 = vsinq.f32 %v738_v14  ;;  %vm745_vm8 = vcmp.lt.s32.totalorder %v1910_v62, 2  ;;  %vm854_vm9 = vcmp.eq.s32.totalorder %v1912_v9, 2  ;;  %vm1106_vm10 = vcmp.lt.s32.totalorder %v1927_v22, 1 }
  0x84   :  { %v928_v32 = vsub.s32 0, %v1925_v20  ;;  %v1090_v36 = vshrl.u32 %v1403_v28, %v1089_v23  ;;  %v1093_v40 = vor.u32 %v1092_v8, %v1091_v27  ;;  %v1105_v52 = vor.u32 %v1104_v37, %v1103_v11 }
  0x85   :  { %vm1109_vm11 = vcmp.lt.s32.totalorder %v1927_v22, 4  ;;  %vm746_vm12 = vcmp.eq.s32.totalorder %v1910_v62, 0  ;;  %vm1108_vm13 = vcmp.lt.s32.totalorder %v1927_v22, 3  ;;  %v1122_v43 = vshll.u32 %v1082_v39, 8 }
  0x86   :  { %v1330_v30 = vmin.u32 %v928_v32, %v1925_v20  ;;  %vm1107_vm14 = vcmp.lt.s32.totalorder %v1927_v22, 2  ;;  %v1111_v57 = vsel %vm1109_vm11, %v1099_v48, 2102212464  ;;  %v1115_v53 = vsel %vm1109_vm11, %v1102_v50, 920167782 }
  0x87   :  { %v1118_v55 = vsel %vm1106_vm10, %v1096_v34, %v1099_v48  ;;  %vm749_vm15 = vcmp.eq.s32.totalorder %v1910_v62, 2  ;;  %v918_v28 = vadd.s32 %v1862_v12, %v1874_v17  ;;  %v1119_v59 = vsel %vm1109_vm11, %v1105_v52, 1326507024 }
  0x88   :  { %v930_v49 = vclz %v1330_v30  ;;  %v1110_v60 = vsel %vm1106_vm10, %v1090_v36, %v1093_v40  ;;  %v1112_v26 = vsel %vm1108_vm13, %v1096_v34, %v1111_v57  ;;  %v1114_v42 = vsel %vm1106_vm10, %v1093_v40, %v1096_v34 }
  0x89   :  { %v1120_v44 = vsel %vm1108_vm13, %v1102_v50, %v1119_v59  ;;  %v1116_v12 = vsel %vm1108_vm13, %v1099_v48, %v1115_v53  ;;  %v1113_v9 = vsel %vm1107_vm14, %v1110_v60, %v1112_v26  ;;  %v948_v8 = vsub.s32 4, %v1906_v51 }
  0x8a   :  { %v1331_v58 = vadd.s32 4294967294, %v930_v49  ;;  %v1121_v17 = vsel %vm1107_vm14, %v1118_v55, %v1120_v44  ;;  %v1117_v3 = vsel %vm1107_vm14, %v1114_v42, %v1116_v12  ;;  %vm863_vm7 = vcmp.le.f32.partialorder %v862_v7, 0.7853982 }
  0x8b   :  { %v1964_v13 = vmul.u32.u64.low %v1122_v43, %v1121_v17  ;;  %v1965_v35 = vmul.u32.u64.high %v1122_v43, %v1121_v17, %v1964_v13  ;;  %v1998_v1 = vmul.u32.u64.low %v1122_v43, %v1117_v3  ;;  %v1999_v54 = vmul.u32.u64.high %v1122_v43, %v1117_v3, %v1998_v1 }
  0x8c   :  { %v1392_v47 = vpop.eup %1391  ;;  %vm1332_vm1 = vcmp.lt.s32.totalorder %v1331_v58, 0  ;;  %v949_v34 = vsel %vm864_vm4, %v948_v8, %v1906_v51  ;;  %vm1076_vm13 = vcmp.lt.s32.totalorder %v1795_v21, 0  ;;  %vm1075_vm14 = vcmp.le.f32.partialorder %v1074_v41, 0.7853982 }
  0x8d   :  { %v1394_v61 = vpop.eup %1393  ;;  %v750_v33 = vxor.u32 2147483648, %v1392_v47  ;;  %v933_v38 = vsel %vm1332_vm1, 0, %v1331_v58  ;;  %vm1131_vm3 = vc.u32 %v1965_v35, %v1998_v1  ;;  %v1132_v6 = vadd.s32 1, %v1999_v54 }
  0x8e   :  { %v747_v15 = vxor.u32 2147483648, %v1394_v61  ;;  %v934_v63 = vsub.s32 32, %v933_v38  ;;  %v935_v0 = vshll.u32 %v1925_v20, %v933_v38  ;;  %v938_v5 = vsub.s32 4294967266, %v933_v38 }
  0x8f   :  { %v751_v46 = vsel %vm749_vm15, %v750_v33, %v1394_v61  ;;  %v856_v45 = vsel %vm854_vm9, %v750_v33, %v1394_v61  ;;  %v1129_v20 = vmul.u32 %v1122_v43, %v1113_v9  ;;  %v1133_v11 = vsel %vm1131_vm3, %v1132_v6, %v1999_v54 }
  0x90   :  { %v748_v4 = vsel %vm746_vm12, %v1392_v47, %v747_v15  ;;  %v853_v25 = vsel %vm851_vm6, %v1392_v47, %v747_v15  ;;  %v936_v10 = vshrl.u32 %v918_v28, %v934_v63  ;;  %v939_v18 = vadd.s32 127, %v938_v5 }
  0x91   :  { %v752_v23 = vsel %vm745_vm8, %v748_v4, %v751_v46  ;;  %v857_v31 = vsel %vm850_vm2, %v853_v25, %v856_v45  ;;  %v1134_v39 = vadd.s32 %v1133_v11, %v1129_v20  ;;  %v951_v36 = vsel %vm863_vm7, 0, %v949_v34 }
  0x92   :  { %v753_v14 = vsel %vm742_vm5, nan, %v752_v23  ;;  %v858_v16 = vsel %vm742_vm5, nan, %v857_v31  ;;  %v937_v62 = vor.u32 %v936_v10, %v935_v0  ;;  %v940_v56 = vshll.u32 %v939_v18, 23 }
  0x93   :  { %1323 = vst.msk [vmem:[%s2038_s1 + $0x1c] sm:$0xf] %vm1424_vm0, %v753_v14  ;;  %1328 = vst.msk [vmem:[%s2038_s1 + $0x20] sm:$0xf] %vm1424_vm0, %v858_v16  ;;  %v1135_v48 = vadd.s32 536870912, %v1134_v39  ;;  %v955_v52 = vadd.s32 3, %v951_v36  ;;  %v1130_v60 = vadd.s32 %v1998_v1, %v1965_v35  ;;  %vm954_vm12 = vweird.f32 %v1721_v29 }
  0x94   :  { %v941_v19 = vor.u32 4788187, %v940_v56  ;;  %v944_v24 = vcvt.s32.f32 %v937_v62  ;;  %v1061_v53 = vand.u32 3, %v951_v36 }
  0x95   :  { %v1136_v37 = vshrl.u32 %v1135_v48, 30  ;;  %v956_v57 = vand.u32 3, %v955_v52 }
  0x96   :  { %v942_v27 = vand.u32 2147483647, %v941_v19  ;;  %vm1066_vm2 = vcmp.eq.s32.totalorder %v1061_v53, 2  ;;  %vm1062_vm8 = vcmp.lt.s32.totalorder %v1061_v53, 2  ;;  %vm1063_vm9 = vcmp.eq.s32.totalorder %v1061_v53, 0 }
  0x97   :  { %v1137_v40 = vshll.u32 %v1136_v37, 30  ;;  %vm961_vm6 = vcmp.eq.s32.totalorder %v956_v57, 2  ;;  %vm958_vm5 = vcmp.eq.s32.totalorder %v956_v57, 0  ;;  %vm957_vm10 = vcmp.lt.s32.totalorder %v956_v57, 2 }
  0x98   :  { %v945_v32 = vmul.f32 %v944_v24, %v942_v27  ;;  %v1160_v3 = vsub.s32 4, %v1136_v37 }
  0x99   :  { %v1138_v49 = vsub.s32 %v1134_v39, %v1137_v40 }
  0x9a   :  { %v946_v22 = vxor.u32 2147483648, %v945_v32  ;;  %v1161_v10 = vsel %vm1076_vm13, %v1160_v3, %v1136_v37 }
  0x9b   :  { %v1140_v43 = vsub.s32 0, %v1138_v49  ;;  %v1163_v18 = vsel %vm1075_vm14, 0, %v1161_v10 }
  0x9c   :  { %v947_v50 = vsel %vm864_vm4, %v946_v22, %v945_v32  ;;  %v1167_v62 = vadd.s32 3, %v1163_v18  ;;  %v1273_v1 = vand.u32 3, %v1163_v18 }
  0x9d   :  { %v950_v30 = vsel %vm863_vm7, %v1721_v29, %v947_v50  ;;  %v1340_v55 = vmin.u32 %v1140_v43, %v1138_v49 }
  0x9e   :  { %1395 = vcosq.f32 %v950_v30  ;;  %v1168_v9 = vand.u32 3, %v1167_v62  ;;  %vm1278_vm1 = vcmp.eq.s32.totalorder %v1273_v1, 2  ;;  %vm1275_vm4 = vcmp.eq.s32.totalorder %v1273_v1, 0 }
  0x9f   :  { %1397 = vsinq.f32 %v950_v30  ;;  %v1142_v28 = vclz %v1340_v55 }
  0xa0   :  { %vm1173_vm15 = vcmp.eq.s32.totalorder %v1168_v9, 2  ;;  %vm1170_vm3 = vcmp.eq.s32.totalorder %v1168_v9, 0  ;;  %vm1169_vm7 = vcmp.lt.s32.totalorder %v1168_v9, 2 }
  0xa1   :  { %v1341_v51 = vadd.s32 4294967294, %v1142_v28 }
  0xa3   :  { %vm1342_vm11 = vcmp.lt.s32.totalorder %v1341_v51, 0 }
  0xa4   :  { %v1145_v44 = vsel %vm1342_vm11, 0, %v1341_v51 }
  0xa5   :  { %v1146_v12 = vsub.s32 32, %v1145_v44  ;;  %v1147_v17 = vshll.u32 %v1138_v49, %v1145_v44  ;;  %v1150_v13 = vsub.s32 4294967266, %v1145_v44 }
  0xa7   :  { %v1148_v63 = vshrl.u32 %v1130_v60, %v1146_v12  ;;  %v1151_v29 = vadd.s32 127, %v1150_v13 }
  0xa8   :  { %v1396_v7 = vpop.eup %1395 }
  0xa9   :  { %v1398_v58 = vpop.eup %1397  ;;  %v962_v59 = vxor.u32 2147483648, %v1396_v7  ;;  %v1149_v35 = vor.u32 %v1148_v63, %v1147_v17  ;;  %v1152_v0 = vshll.u32 %v1151_v29, 23 }
  0xaa   :  { %v959_v47 = vxor.u32 2147483648, %v1398_v58 }
  0xab   :  { %v963_v26 = vsel %vm961_vm6, %v962_v59, %v1398_v58  ;;  %v1068_v42 = vsel %vm1066_vm2, %v962_v59, %v1398_v58  ;;  %v1153_v4 = vor.u32 4788187, %v1152_v0  ;;  %v1156_v25 = vcvt.s32.f32 %v1149_v35 }
  0xac   :  { %v960_v61 = vsel %vm958_vm5, %v1396_v7, %v959_v47  ;;  %v1065_v33 = vsel %vm1063_vm9, %v1396_v7, %v959_v47  ;;  %vm1274_vm6 = vcmp.lt.s32.totalorder %v1273_v1, 2  ;;  %vm1166_vm2 = vweird.f32 %v1795_v21 }
  0xad   :  { %v964_v15 = vsel %vm957_vm10, %v960_v61, %v963_v26  ;;  %v1069_v38 = vsel %vm1062_vm8, %v1065_v33, %v1068_v42  ;;  %v1154_v5 = vand.u32 2147483647, %v1153_v4 }
  0xae   :  { %v965_v46 = vsel %vm954_vm12, nan, %v964_v15  ;;  %v1070_v45 = vsel %vm954_vm12, nan, %v1069_v38 }
  0xaf   :  { %1333 = vst.msk [vmem:[%s2038_s1 + $0x24] sm:$0xf] %vm1424_vm0, %v965_v46  ;;  %1338 = vst.msk [vmem:[%s2038_s1 + $0x28] sm:$0xf] %vm1424_vm0, %v1070_v45  ;;  %v1157_v23 = vmul.f32 %v1156_v25, %v1154_v5 }
  0xb1   :  { %v1158_v31 = vxor.u32 2147483648, %v1157_v23 }
  0xb3   :  { %v1159_v14 = vsel %vm1076_vm13, %v1158_v31, %v1157_v23 }
  0xb4   :  { %v1162_v16 = vsel %vm1075_vm14, %v1795_v21, %v1159_v14 }
  0xb5   :  { %1399 = vcosq.f32 %v1162_v16 }
  0xb6   :  { %1401 = vsinq.f32 %v1162_v16 }
  0xbf   :  { %v1400_v54 = vpop.eup %1399 }
  0xc0   :  { %v1402_v56 = vpop.eup %1401  ;;  %v1174_v19 = vxor.u32 2147483648, %v1400_v54 }
  0xc1   :  { %v1171_v41 = vxor.u32 2147483648, %v1402_v56 }
  0xc2   :  { %v1175_v24 = vsel %vm1173_vm15, %v1174_v19, %v1402_v56  ;;  %v1280_v20 = vsel %vm1278_vm1, %v1174_v19, %v1402_v56 }
  0xc3   :  { %v1172_v6 = vsel %vm1170_vm3, %v1400_v54, %v1171_v41  ;;  %v1277_v27 = vsel %vm1275_vm4, %v1400_v54, %v1171_v41 }
  0xc4   :  { %v1176_v8 = vsel %vm1169_vm7, %v1172_v6, %v1175_v24  ;;  %v1281_v11 = vsel %vm1274_vm6, %v1277_v27, %v1280_v20 }
  0xc5   :  { %v1177_v32 = vsel %vm1166_vm2, nan, %v1176_v8  ;;  %v1282_v39 = vsel %vm1166_vm2, nan, %v1281_v11 }
  0xc6   :  { %1343 = vst.msk [vmem:[%s2038_s1 + $0x2c] sm:$0xf] %vm1424_vm0, %v1177_v32  ;;  %1348 = vst.msk [vmem:[%s2038_s1 + $0x30] sm:$0xf] %vm1424_vm0, %v1282_v39 }

</bundles_post_ra>
